<compile_context>
chip_gen: v5e
topology: v5e:2x2
jax: 0.10.0
libtpu: 0.0.40
codegen_flags: <defaults>
</compile_context>

<pallas_src>
import jax
import jax.numpy as jnp
from jax.experimental import pallas as pl
from jax.experimental.pallas import tpu as pltpu


D_MODEL = 64
DIM_FF = 128
DIM_F = DIM_FF // 2  # 64


def _cdiv(a, b):
    return -(-a // b)


def _round_up(a, b):
    return ((a + b - 1) // b) * b


def _db_glu_pair_kernel(x_ref, w1_ref, b1_ref, w2_ref, b2_ref, o_ref):
    # x_ref:  (tm, 128)   two consecutive input rows packed per 128-lane row
    # w1_ref: (128, 256)  [blockdiag(W1a, W1a) | blockdiag(W1b, W1b)]
    # b1_ref: (1, 256)    [b1a, b1a, b1b, b1b]   (kept f32)
    # w2_ref: (128, 128)  blockdiag(W2, W2)
    # b2_ref: (1, 128)    [b2, b2]               (kept f32)
    # o_ref:  (tm, 128)   two consecutive output rows packed per 128-lane row
    x = x_ref[...]
    h = jnp.dot(x.astype(w1_ref.dtype), w1_ref[...],
                preferred_element_type=jnp.float32) + b1_ref[...]
    # 128-lane-aligned static slices (vreg-boundary, no relayout).
    a = h[:, :DIM_FF]       # [x1_r0 | x1_r1]
    b = h[:, DIM_FF:]       # [x2_r0 | x2_r1]
    # merge_method='add' GLU gate, full-width VPU, f32 (v5e has no bf16 VPU).
    g = a * jnp.maximum(b, 0.0) + b * jnp.maximum(a, 0.0)
    y = jnp.dot(g.astype(w2_ref.dtype), w2_ref[...],
                preferred_element_type=jnp.float32) + b2_ref[...]
    o_ref[...] = y.astype(o_ref.dtype)


def _block_diag2(w):
    r, c = w.shape
    z = jnp.zeros((r, c), w.dtype)
    top = jnp.concatenate([w, z], axis=1)
    bot = jnp.concatenate([z, w], axis=1)
    return jnp.concatenate([top, bot], axis=0)


def _pack_weights(w1, b1, w2, b2, mxu_dtype):
    # Built once per call in the wrapper (tiny, folds under jit).
    w1a, w1b = w1[:, :DIM_F], w1[:, DIM_F:]            # (64, 64) each
    b1a, b1b = b1[:, :DIM_F], b1[:, DIM_F:]            # (1, 64) each
    w1_pk = jnp.concatenate([_block_diag2(w1a), _block_diag2(w1b)], axis=1)  # (128, 256)
    b1_pk = jnp.concatenate([b1a, b1a, b1b, b1b], axis=1)                    # (1, 256)
    w2_pk = _block_diag2(w2)                                                 # (128, 128)
    b2_pk = jnp.concatenate([b2, b2], axis=1)                                # (1, 128)
    if mxu_dtype is not None:
        w1_pk = w1_pk.astype(mxu_dtype)
        w2_pk = w2_pk.astype(mxu_dtype)
    return w1_pk, b1_pk, w2_pk, b2_pk


def db_glu_block(x, w1, b1, w2, b2, *, tm=512, use_bf16_mxu=False):
    """x: [B, S, d_model] float32.  w1:[64,128] b1:[1,128] w2:[64,64] b2:[1,64].

    Weights are stored [in, out] (transposed vs. PyTorch's nn.Linear [out, in]).
    `tm` is the row-PAIR tile (512 pairs == 1024 original rows == 256 KiB of x
    per grid step).  Returns [B, S, d_model].
    """
    B, S, D = x.shape
    assert D == D_MODEL
    assert w1.shape == (D_MODEL, DIM_FF) and b1.shape == (1, DIM_FF)
    assert w2.shape == (DIM_F, D_MODEL) and b2.shape == (1, D_MODEL)
    assert DIM_FF == 2 * DIM_F  # the a/b split below relies on this

    M = B * S
    x2d = x.reshape(M, D_MODEL)
    if M % 2:
        # TODO(synk): odd total row counts take a one-row pad (extra HBM copy
        # of x); never hit for the usual even B*S.
        x2d = jnp.pad(x2d, ((0, 1), (0, 0)))
    m_even = x2d.shape[0]
    P = m_even // 2
    # Contiguous row-pair packing: a pure metadata reshape, no HBM copy.
    x_pair = x2d.reshape(P, 2 * D_MODEL)

    mxu_dtype = jnp.bfloat16 if use_bf16_mxu else None
    w1_pk, b1_pk, w2_pk, b2_pk = _pack_weights(w1, b1, w2, b2, mxu_dtype)

    # Row-pair tile: multiple of the sublane granularity (16 when bf16 values
    # flow through the MXU), no bigger than the row count, and small enough
    # that the grid has >= 2 steps whenever possible (v7x megacore sharding).
    sub = 16 if use_bf16_mxu else 8
    tm_eff = min(tm, _round_up(_cdiv(P, 2), sub), _round_up(P, sub))
    tm_eff = max(sub, (tm_eff // sub) * sub)
    grid = (_cdiv(P, tm_eff),)   # ragged last block handled by Pallas masking

    itemsize = jnp.dtype(x.dtype).itemsize
    w_itemsize = 2 if use_bf16_mxu else 4
    flops = 2 * P * (2 * D_MODEL) * (2 * DIM_FF + 2 * D_MODEL)
    bytes_accessed = (
        P * (2 * D_MODEL) * itemsize * 2                      # x in + y out
        + (2 * D_MODEL * 2 * DIM_FF + 2 * DIM_FF * D_MODEL // 1) * w_itemsize
        + (2 * DIM_FF + 2 * D_MODEL) * 4                      # biases (f32)
    )

    out = pl.pallas_call(
        _db_glu_pair_kernel,
        out_shape=jax.ShapeDtypeStruct((P, 2 * D_MODEL), x.dtype),
        grid_spec=pltpu.PrefetchScalarGridSpec(
            num_scalar_prefetch=0,
            grid=grid,
            in_specs=[
                pl.BlockSpec((tm_eff, 2 * D_MODEL), lambda i: (i, 0)),    # x pairs
                pl.BlockSpec(w1_pk.shape, lambda i: (0, 0)),              # W1 packed (resident)
                pl.BlockSpec(b1_pk.shape, lambda i: (0, 0)),              # b1 packed
                pl.BlockSpec(w2_pk.shape, lambda i: (0, 0)),              # W2 packed (resident)
                pl.BlockSpec(b2_pk.shape, lambda i: (0, 0)),              # b2 packed
            ],
            out_specs=pl.BlockSpec((tm_eff, 2 * D_MODEL), lambda i: (i, 0)),
        ),
        compiler_params=pltpu.CompilerParams(
            dimension_semantics=("parallel",),
        ),
        cost_estimate=pl.CostEstimate(
            flops=flops, transcendentals=0, bytes_accessed=bytes_accessed
        ),
    )(x_pair, w1_pk, b1_pk, w2_pk, b2_pk)

    out = out.reshape(m_even, D_MODEL)
    if m_even != M:
        out = out[:M]
    return out.reshape(B, S, D_MODEL)


def _reference(x, w1, b1, w2, b2):
    h = x @ w1 + b1
    x1, x2 = h[..., :DIM_F], h[..., DIM_F:]
    g = x1 * jax.nn.relu(x2) + x2 * jax.nn.relu(x1)
    return g @ w2 + b2


if __name__ == "__main__":
    key = jax.random.PRNGKey(0)
    k_x, k_w1, k_b1, k_w2, k_b2 = jax.random.split(key, 5)

    # Small shapes consistent with the module: batch=2, seq=8, d_model=64.
    B, S = 2, 8
    x = jax.random.normal(k_x, (B, S, D_MODEL), dtype=jnp.float32)

    # Deterministic parameter init (Kaiming-uniform-ish scale, like nn.Linear).
    lim1 = 1.0 / jnp.sqrt(D_MODEL)
    lim2 = 1.0 / jnp.sqrt(DIM_F)
    # Stored as [in, out] (transposed vs. PyTorch's [out, in]).
    w1 = jax.random.uniform(k_w1, (D_MODEL, DIM_FF), jnp.float32, -lim1, lim1)
    b1 = jax.random.uniform(k_b1, (1, DIM_FF), jnp.float32, -lim1, lim1)
    w2 = jax.random.uniform(k_w2, (DIM_F, D_MODEL), jnp.float32, -lim2, lim2)
    b2 = jax.random.uniform(k_b2, (1, D_MODEL), jnp.float32, -lim2, lim2)

    y_ref = _reference(x, w1, b1, w2, b2)

    # Exact (f32) path -- semantic parity with the PyTorch module.
    y = db_glu_block(x, w1, b1, w2, b2)
    y = jax.block_until_ready(y)
    assert y.shape == (B, S, D_MODEL)
    assert jnp.allclose(y, y_ref, atol=2e-5, rtol=1e-4), "f32 mismatch vs reference"

    # bf16-at-the-MXU path (v6e/v7x HBM/MXU win); gate & accumulation stay f32.
    y_bf16 = db_glu_block(x, w1, b1, w2, b2, use_bf16_mxu=True)
    y_bf16 = jax.block_until_ready(y_bf16)
    assert jnp.allclose(y_bf16, y_ref, atol=8e-2, rtol=5e-2), "bf16 mismatch vs reference"

    print("KERNEL_OK")
</pallas_src>

<mosaic_0001>
module attributes {stable_mosaic.version = 11 : i64} {
  func.func @_db_glu_pair_kernel(%arg0: i32, %arg1: memref<8x128xf32, #tpu.memory_space<vmem>>, %arg2: memref<128x256xf32, #tpu.memory_space<vmem>>, %arg3: memref<1x256xf32, #tpu.memory_space<vmem>>, %arg4: memref<128x128xf32, #tpu.memory_space<vmem>>, %arg5: memref<1x128xf32, #tpu.memory_space<vmem>>, %arg6: memref<8x128xf32, #tpu.memory_space<vmem>>) attributes {dimension_semantics = [#tpu.dimension_semantics<parallel>], iteration_bounds = array<i64: 1>, scalar_prefetch = 0 : i64, scratch_operands = 0 : i64, tpu.core_type = #tpu.core_type<tc>, window_params = [{transform_indices = @transform_0, window_bounds = array<i64: 8, 128>}, {pipeline_mode = #tpu.pipeline_mode<synchronous>, transform_indices = @transform_1, window_bounds = array<i64: 128, 256>}, {pipeline_mode = #tpu.pipeline_mode<synchronous>, transform_indices = @transform_2, window_bounds = array<i64: 1, 256>}, {pipeline_mode = #tpu.pipeline_mode<synchronous>, transform_indices = @transform_3, window_bounds = array<i64: 128, 128>}, {pipeline_mode = #tpu.pipeline_mode<synchronous>, transform_indices = @transform_4, window_bounds = array<i64: 1, 128>}, {transform_indices = @transform_5, window_bounds = array<i64: 8, 128>}]} {
    %c0 = arith.constant 0 : index
    %c0_0 = arith.constant 0 : index
    %0 = vector.load %arg1[%c0, %c0_0] : memref<8x128xf32, #tpu.memory_space<vmem>>, vector<8x128xf32>
    %c0_1 = arith.constant 0 : index
    %c0_2 = arith.constant 0 : index
    %1 = vector.load %arg2[%c0_1, %c0_2] : memref<128x256xf32, #tpu.memory_space<vmem>>, vector<128x256xf32>
    %cst = arith.constant dense<0.000000e+00> : vector<8x256xf32>
    %2 = tpu.matmul %0, %1, %cst {dimension_numbers = #tpu.dot_dimension_numbers<[1], [0], [0], [1], [0, 0, 1, 1], [], []>} : vector<8x128xf32>, vector<128x256xf32>, vector<8x256xf32> -> vector<8x256xf32>
    %c0_3 = arith.constant 0 : index
    %c0_4 = arith.constant 0 : index
    %3 = vector.load %arg3[%c0_3, %c0_4] : memref<1x256xf32, #tpu.memory_space<vmem>>, vector<1x256xf32>
    %4 = vector.broadcast %3 : vector<1x256xf32> to vector<8x256xf32>
    %5 = arith.addf %2, %4 : vector<8x256xf32>
    %6 = vector.extract_strided_slice %5 {offsets = [0, 0], sizes = [8, 128], strides = [1, 1]} : vector<8x256xf32> to vector<8x128xf32>
    %7 = vector.extract_strided_slice %5 {offsets = [0, 128], sizes = [8, 128], strides = [1, 1]} : vector<8x256xf32> to vector<8x128xf32>
    %cst_5 = arith.constant 0.000000e+00 : f32
    %8 = vector.broadcast %cst_5 : f32 to vector<8x128xf32>
    %9 = arith.maximumf %7, %8 : vector<8x128xf32>
    %10 = arith.mulf %6, %9 : vector<8x128xf32>
    %cst_6 = arith.constant 0.000000e+00 : f32
    %11 = vector.broadcast %cst_6 : f32 to vector<8x128xf32>
    %12 = arith.maximumf %6, %11 : vector<8x128xf32>
    %13 = arith.mulf %7, %12 : vector<8x128xf32>
    %14 = arith.addf %10, %13 : vector<8x128xf32>
    %c0_7 = arith.constant 0 : index
    %c0_8 = arith.constant 0 : index
    %15 = vector.load %arg4[%c0_7, %c0_8] : memref<128x128xf32, #tpu.memory_space<vmem>>, vector<128x128xf32>
    %cst_9 = arith.constant dense<0.000000e+00> : vector<8x128xf32>
    %16 = tpu.matmul %14, %15, %cst_9 {dimension_numbers = #tpu.dot_dimension_numbers<[1], [0], [0], [1], [0, 0, 1, 1], [], []>} : vector<8x128xf32>, vector<128x128xf32>, vector<8x128xf32> -> vector<8x128xf32>
    %c0_10 = arith.constant 0 : index
    %c0_11 = arith.constant 0 : index
    %17 = vector.load %arg5[%c0_10, %c0_11] : memref<1x128xf32, #tpu.memory_space<vmem>>, vector<1x128xf32>
    %18 = vector.broadcast %17 : vector<1x128xf32> to vector<8x128xf32>
    %19 = arith.addf %16, %18 : vector<8x128xf32>
    %c0_12 = arith.constant 0 : index
    %c0_13 = arith.constant 0 : index
    %20 = vector.load %arg6[%c0_12, %c0_13] : memref<8x128xf32, #tpu.memory_space<vmem>>, vector<8x128xf32>
    tpu.vector_store %arg6[%c0_12, %c0_13], %19 {strides = array<i32>} : memref<8x128xf32, #tpu.memory_space<vmem>>, vector<8x128xf32>,
    return
  }
  func.func @transform_0(%arg0: i32) -> (i32, i32) {
    %c0_i32 = arith.constant 0 : i32
    %c0_i32_0 = arith.constant 0 : i32
    return %arg0, %c0_i32 : i32, i32
  }
  func.func @transform_1(%arg0: i32) -> (i32, i32) {
    %c0_i32 = arith.constant 0 : i32
    %c0_i32_0 = arith.constant 0 : i32
    %c0_i32_1 = arith.constant 0 : i32
    return %c0_i32, %c0_i32_0 : i32, i32
  }
  func.func @transform_2(%arg0: i32) -> (i32, i32) {
    %c0_i32 = arith.constant 0 : i32
    %c0_i32_0 = arith.constant 0 : i32
    %c0_i32_1 = arith.constant 0 : i32
    return %c0_i32, %c0_i32_0 : i32, i32
  }
  func.func @transform_3(%arg0: i32) -> (i32, i32) {
    %c0_i32 = arith.constant 0 : i32
    %c0_i32_0 = arith.constant 0 : i32
    %c0_i32_1 = arith.constant 0 : i32
    return %c0_i32, %c0_i32_0 : i32, i32
  }
  func.func @transform_4(%arg0: i32) -> (i32, i32) {
    %c0_i32 = arith.constant 0 : i32
    %c0_i32_0 = arith.constant 0 : i32
    %c0_i32_1 = arith.constant 0 : i32
    return %c0_i32, %c0_i32_0 : i32, i32
  }
  func.func @transform_5(%arg0: i32) -> (i32, i32) {
    %c0_i32 = arith.constant 0 : i32
    %c0_i32_0 = arith.constant 0 : i32
    return %arg0, %c0_i32 : i32, i32
  }
}

</mosaic_0001>

<bundles_post_ra>
// kernel: tpu_custom_call.1
= control target key start
LH: loop header
LB: loop body
LE: loop exit
PB: predicated region body
PF: predicated region fallthrough
CT: control target
= control target key end

     0   :  { %10 = vsyncpa [#allocation3], 0  ;;  %s419_s0 = inlined_call_operand.hbm [shape: f32[8,128], index: 0, kind: input, shape index: {}]   ;;  %s420_s1 = inlined_call_operand.hbm [shape: f32[128,256], index: 1, kind: input, shape index: {}]   ;;  %s421_s2 = inlined_call_operand.hbm [shape: f32[1,256], index: 2, kind: input, shape index: {}]   ;;  %s422_s3 = inlined_call_operand.hbm [shape: f32[128,128], index: 3, kind: input, shape index: {}]   ;;  %s423_s4 = inlined_call_operand.vmem [shape: f32[1,128], index: 4, kind: input, shape index: {}]   ;;  %s424_s5 = inlined_call_operand.hbm [shape: f32[8,128], index: 5, kind: output, shape index: {}]  }
   0x1   :  { %11 = vsyncpa [#allocation6], 0 }
   0x2   :  { %12 = vsyncpa [#allocation9], 0  ;;  %s29_s20 = sshll.u32 %s420_s1, 4  ;;  %s30_s20 = int_to_ptr.hbm [resolvable:$true] %s29_s20 }
   0x3   :  { %13 = vsyncpa [#allocation4], 0  ;;  %s362_s21 = smov [#allocation5]   ;;  %s19_s25 = sshll.u32 %s419_s0, 4  ;;  %s20_s25 = int_to_ptr.hbm [resolvable:$true] %s19_s25 }
   0x4   :  { %s31_s22 = sshll.u32 %s362_s21, 4  ;;  %s363_s26 = smov 256   ;;  %s32_s22 = int_to_ptr.vmem [resolvable:$true] %s31_s22 }
   0x5   :  { %s364_s27 = smov 16   ;;  %s365_s28 = smov [#allocation2]  }
   0x6   :  { %37 = dma.hbm_to_vmem [thread:$0]  %s30_s20, 4096, %s32_s22, [#allocation6], %s363_s26, %s363_s26, %s364_s27  }
   0x7   :  { %s21_s29 = sshll.u32 %s365_s28, 4  ;;  %s43_s7 = sshll.u32 %s421_s2, 4  ;;  %s22_s29 = int_to_ptr.vmem [resolvable:$true] %s21_s29  ;;  %s44_s7 = int_to_ptr.hbm [resolvable:$true] %s43_s7 }
   0x8   :  { %24 = dma.hbm_to_vmem [thread:$0]  %s20_s25, 128, %s22_s29, [#allocation3]  }
   0x9   :  { %s53_s9 = sshll.u32 %s422_s3, 4  ;;  %s366_s10 = smov [#allocation7]   ;;  %s54_s9 = int_to_ptr.hbm [resolvable:$true] %s53_s9 }
   0xa   :  { %s45_s11 = sshll.u32 %s366_s10, 4  ;;  %s367_s0 = smov [#allocation8]   ;;  %s46_s11 = int_to_ptr.vmem [resolvable:$true] %s45_s11 }
   0xb   :  { %48 = dma.hbm_to_vmem [thread:$0]  %s44_s7, 32, %s46_s11, [#allocation6]  }
   0xc   :  { %s55_s12 = sshll.u32 %s367_s0, 4  ;;  %s368_s13 = smov 128   ;;  %s56_s12 = int_to_ptr.vmem [resolvable:$true] %s55_s12 }
   0xd   :  { %s369_s14 = smov 8  }
   0xe   :  { %61 = dma.hbm_to_vmem [thread:$0]  %s54_s9, 2048, %s56_s12, [#allocation9], %s368_s13, %s368_s13, %s369_s14  }
   0xf   :  { %354 = dma.done.wait [#allocation3], 128  }
  0x10   :  { %355 = vsyncadd [#allocation3], 4294967168 }
  0x11   :  { %356 = dma.done.wait [#allocation6], 4128  }
  0x12   :  { %357 = vsyncadd [#allocation6], 4294963168 }
  0x13   :  { %358 = dma.done.wait [#allocation9], 2048  }
  0x14   :  { %359 = vsyncadd [#allocation9], 4294965248  ;;  %v111_v0 = vld [vmem:[#allocation5 + $0xf0] sm:$0xff]  ;;  %v112_v1 = vld [vmem:[#allocation5 + $0xf8] sm:$0xff]  ;;  %s370_s15 = smov [#allocation10]   ;;  %s212_s19 = sshll.u32 %s424_s5, 4  ;;  %s213_s19 = int_to_ptr.hbm [resolvable:$true] %s212_s19 }
  0x15   :  { %v109_v2 = vld [vmem:[#allocation5 + $0xe0] sm:$0xff]  ;;  %119 = vmatpush.msra.mxu0 %v111_v0  ;;  %139 = vmatpush.msra.mxu1 %v112_v1  ;;  %v110_v3 = vld [vmem:[#allocation5 + $0xe8] sm:$0xff]  ;;  %v107_v4 = vld [vmem:[#allocation5 + $0xd0] sm:$0xff]  ;;  %s210_s16 = sshll.u32 %s370_s15, 4  ;;  %s211_s16 = int_to_ptr.vmem [resolvable:$true] %s210_s16 }
  0x16   :  { %v108_v5 = vld [vmem:[#allocation5 + $0xd8] sm:$0xff]  ;;  %v105_v6 = vld [vmem:[#allocation5 + $0xc0] sm:$0xff]  ;;  %v106_v7 = vld [vmem:[#allocation5 + $0xc8] sm:$0xff] }
  0x17   :  { %120 = vmatpush.msra.mxu0 %v109_v2  ;;  %140 = vmatpush.msra.mxu1 %v110_v3  ;;  %v103_v8 = vld [vmem:[#allocation5 + $0xb0] sm:$0xff]  ;;  %v104_v9 = vld [vmem:[#allocation5 + $0xb8] sm:$0xff]  ;;  %v101_v10 = vld [vmem:[#allocation5 + $0xa0] sm:$0xff] }
  0x18   :  { %v102_v11 = vld [vmem:[#allocation5 + $0xa8] sm:$0xff]  ;;  %v99_v12 = vld [vmem:[#allocation5 + $0x90] sm:$0xff]  ;;  %v100_v13 = vld [vmem:[#allocation5 + $0x98] sm:$0xff] }
  0x19   :  { %121 = vmatpush.msra.mxu0 %v107_v4  ;;  %141 = vmatpush.msra.mxu1 %v108_v5  ;;  %v179_v14 = vld [vmem:[#allocation8 + $0x78] sm:$0xff]  ;;  %v178_v15 = vld [vmem:[#allocation8 + $0x70] sm:$0xff]  ;;  %v98_v17 = vld [vmem:[#allocation5 + $0x88] sm:$0xff] }
  0x1a   :  { %v97_v16 = vld [vmem:[#allocation5 + $0x80] sm:$0xff]  ;;  %184 = vmatpush.msra.mxu2 %v179_v14  ;;  %v177_v18 = vld [vmem:[#allocation8 + $0x68] sm:$0xff]  ;;  %v96_v20 = vld [vmem:[#allocation5 + $0x78] sm:$0xff] }
  0x1b   :  { %122 = vmatpush.msra.mxu0 %v105_v6  ;;  %142 = vmatpush.msra.mxu1 %v106_v7  ;;  %v95_v19 = vld [vmem:[#allocation5 + $0x70] sm:$0xff]  ;;  %v176_v21 = vld [vmem:[#allocation8 + $0x60] sm:$0xff]  ;;  %v175_v24 = vld [vmem:[#allocation8 + $0x58] sm:$0xff] }
  0x1c   :  { %185 = vmatpush.msra.mxu2 %v178_v15  ;;  %v93_v22 = vld [vmem:[#allocation5 + $0x60] sm:$0xff]  ;;  %v94_v23 = vld [vmem:[#allocation5 + $0x68] sm:$0xff]  ;;  %v91_v25 = vld [vmem:[#allocation5 + $0x50] sm:$0xff] }
  0x1d   :  { %123 = vmatpush.msra.mxu0 %v103_v8  ;;  %143 = vmatpush.msra.mxu1 %v104_v9  ;;  %v92_v26 = vld [vmem:[#allocation5 + $0x58] sm:$0xff]  ;;  %v89_v28 = vld [vmem:[#allocation5 + $0x40] sm:$0xff]  ;;  %v90_v29 = vld [vmem:[#allocation5 + $0x48] sm:$0xff] }
  0x1e   :  { %186 = vmatpush.msra.mxu2 %v177_v18  ;;  %v174_v27 = vld [vmem:[#allocation8 + $0x50] sm:$0xff]  ;;  %v173_v30 = vld [vmem:[#allocation8 + $0x48] sm:$0xff]  ;;  %v172_v33 = vld [vmem:[#allocation8 + $0x40] sm:$0xff] }
  0x1f   :  { %124 = vmatpush.msra.mxu0 %v101_v10  ;;  %144 = vmatpush.msra.mxu1 %v102_v11  ;;  %v87_v31 = vld [vmem:[#allocation5 + $0x30] sm:$0xff]  ;;  %v88_v32 = vld [vmem:[#allocation5 + $0x38] sm:$0xff]  ;;  %v85_v34 = vld [vmem:[#allocation5 + $0x20] sm:$0xff] }
  0x20   :  { %187 = vmatpush.msra.mxu2 %v176_v21  ;;  %v86_v35 = vld [vmem:[#allocation5 + $0x28] sm:$0xff]  ;;  %v171_v36 = vld [vmem:[#allocation8 + $0x38] sm:$0xff]  ;;  %v83_v37 = vld [vmem:[#allocation5 + $0x10] sm:$0xff] }
  0x21   :  { %125 = vmatpush.msra.mxu0 %v99_v12  ;;  %145 = vmatpush.msra.mxu1 %v100_v13  ;;  %v84_v38 = vld [vmem:[#allocation5 + $0x18] sm:$0xff]  ;;  %v81_v40 = vld [vmem:[#allocation5] sm:$0xff]  ;;  %v82_v41 = vld [vmem:[#allocation5 + $0x8] sm:$0xff] }
  0x22   :  { %188 = vmatpush.msra.mxu2 %v175_v24  ;;  %v170_v39 = vld [vmem:[#allocation8 + $0x30] sm:$0xff]  ;;  %v169_v43 = vld [vmem:[#allocation8 + $0x28] sm:$0xff]  ;;  %v168_v44 = vld [vmem:[#allocation8 + $0x20] sm:$0xff] }
  0x23   :  { %126 = vmatpush.msra.mxu0 %v97_v16  ;;  %146 = vmatpush.msra.mxu1 %v98_v17  ;;  %v80_v42 = vld [vmem:[#allocation2] sm:$0xff]  ;;  %v165_v47 = vld [vmem:[#allocation8 + $0x8] sm:$0xff]  ;;  %v164_v48 = vld [vmem:[#allocation8] sm:$0xff] }
  0x24   :  { %189 = vmatpush.msra.mxu2 %v174_v27  ;;  %v167_v45 = vld [vmem:[#allocation8 + $0x18] sm:$0xff]  ;;  %v166_v46 = vld [vmem:[#allocation8 + $0x10] sm:$0xff] }
  0x25   :  { %127 = vmatpush.msra.mxu0 %v95_v19  ;;  %147 = vmatpush.msra.mxu1 %v96_v20  ;;  %v113_v49 = vld [vmem:[#allocation7] sm:$0x3]  ;;  %v233_v61 = vld [vmem:[%s423_s4] ss:$0 sm:$0xff] }
  0x26   :  { %190 = vmatpush.msra.mxu2 %v173_v30  ;;  %v115_v50 = vperm.slane %v113_v49, 0  ;;  %v116_v51 = vperm.slane %v113_v49, 1 }
  0x27   :  { %128 = vmatpush.msra.mxu0 %v93_v22  ;;  %148 = vmatpush.msra.mxu1 %v94_v23 }
  0x28   :  { %191 = vmatpush.msra.mxu2 %v172_v33 }
  0x29   :  { %129 = vmatpush.msra.mxu0 %v91_v25  ;;  %149 = vmatpush.msra.mxu1 %v92_v26 }
  0x2a   :  { %192 = vmatpush.msra.mxu2 %v171_v36 }
  0x2b   :  { %130 = vmatpush.msra.mxu0 %v89_v28  ;;  %150 = vmatpush.msra.mxu1 %v90_v29 }
  0x2c   :  { %193 = vmatpush.msra.mxu2 %v170_v39 }
  0x2d   :  { %131 = vmatpush.msra.mxu0 %v87_v31  ;;  %151 = vmatpush.msra.mxu1 %v88_v32 }
  0x2e   :  { %194 = vmatpush.msra.mxu2 %v169_v43 }
  0x2f   :  { %132 = vmatpush.msra.mxu0 %v85_v34  ;;  %152 = vmatpush.msra.mxu1 %v86_v35 }
  0x30   :  { %195 = vmatpush.msra.mxu2 %v168_v44 }
  0x31   :  { %133 = vmatpush.msra.mxu0 %v83_v37  ;;  %153 = vmatpush.msra.mxu1 %v84_v38 }
  0x32   :  { %196 = vmatpush.msra.mxu2 %v167_v45 }
  0x33   :  { %134 = vmatpush.msra.mxu0 %v81_v40  ;;  %154 = vmatpush.msra.mxu1 %v82_v41 }
  0x34   :  { %135 = vmatmul.f32.vlgmr.msra.gmra.mxu0 %v80_v42  ;;  %155 = vmatmul.f32.vlgmr.msra.gmra.mxu1 %v80_v42 }
  0x35   :  { %197 = vmatpush.msra.mxu2 %v166_v46 }
  0x37   :  { %198 = vmatpush.msra.mxu2 %v165_v47 }
  0x39   :  { %199 = vmatpush.msra.mxu2 %v164_v48 }
  0xb1   :  { %v136_v52 = vpop.f32.mrf.mxu0  ;;  %v156_v53 = vpop.f32.mrf.mxu1 }
  0xb2   :  { %v137_v54 = vadd.f32 %v136_v52, %v115_v50  ;;  %v157_v55 = vadd.f32 %v156_v53, %v116_v51 }
  0xb4   :  { %v161_v56 = vmax.f32 %v137_v54, 0.0  ;;  %v159_v57 = vmax.f32 %v157_v55, 0.0 }
  0xb6   :  { %v162_v58 = vmul.f32 %v161_v56, %v157_v55  ;;  %v160_v59 = vmul.f32 %v159_v57, %v137_v54 }
  0xb8   :  { %v163_v60 = vadd.f32 %v162_v58, %v160_v59 }
  0xba   :  { %200 = vmatmul.f32.vlgmr.msra.gmra.mxu2 %v163_v60 }
 0x13d   :  { %v201_v62 = vpop.f32.mrf.mxu2 }
 0x13e   :  { %v202_v63 = vadd.f32 %v233_v61, %v201_v62 }
 0x140   :  { %204 = vst [vmem:[#allocation10] sm:$0xff] %v202_v63 }
 0x141   :  { %215 = dma.vmem_to_hbm [thread:$0]  %s211_s16, 128, %s213_s19, [#allocation4]  }
 0x142   :  { %360 = dma.done.wait [#allocation4], 128  }
 0x143   :  { %361 = vsyncadd [#allocation4], 4294967168 }
 0x144   :  { %220 = vsyncpa [#allocation3], 1 }
 0x145   :  { %221 = vsyncpa [#allocation6], 1 }
 0x146   :  { %222 = vsyncpa [#allocation9], 1 }
 0x147   :  { %223 = vsyncpa [#allocation4], 1 }

</bundles_post_ra>
